<compile_context>
chip_gen: v5e
topology: v5e:2x2
jax: 0.10.0
libtpu: 0.0.40
codegen_flags: <defaults>
</compile_context>

<pallas_src>
import jax
import jax.numpy as jnp
from jax.experimental import pallas as pl
from jax.experimental.pallas import tpu as pltpu

NUM_CLASSES = 1357            # nn.Linear(dim, 1357)
LANES = 128
MAX_BLOCK_B = 128             # cap on the batch tile (one MXU-friendly pass)


def _round_up(x, m):
    return (x + m - 1) // m * m


def _cleavage_head_kernel(feats_ref, mask_ref, w_ref, b_ref, out_ref):
    """Fused masked-mean pooling + linear projection for one batch tile.

    feats_ref : (BM, N, D)    node features
    mask_ref  : (BM, N, 1)    1.0 = valid node, 0.0 = padding
    w_ref     : (D, C_pad)    resident linear weight (class dim lane-padded)
    b_ref     : (1, C_pad)    resident bias
    out_ref   : (BM, C_pad)   logits tile
    """
    m = mask_ref[...]                                           # (BM, N, 1)
    counts = jnp.sum(m, axis=1)                                 # (BM, 1)

    # Masked mean pooling over nodes, in the same order as the reference:
    # sum(feats * mask) / count. m broadcasts along the lane (D) axis only,
    # so no cross-lane relayout is needed.
    masked_sum = jnp.sum(feats_ref[...] * m, axis=1)            # (BM, D)
    # Exact f32 divide over ~BM values (negligible); clamp at 1.0 so rows with
    # zero valid nodes (padded batch rows) pool to exactly 0.
    pooled = masked_sum / jnp.maximum(counts, 1.0)              # (BM, D)

    # Linear head on the MXU; C_pad = 1408 keeps the store lane-dense.
    logits = jnp.dot(pooled, w_ref[...],
                     preferred_element_type=jnp.float32)        # (BM, C_pad)
    out_ref[...] = logits + b_ref[...]


def se3_backbone_stub(feats, coors, mask, adj_mat):
    # TODO(synk): real SE(3)-Transformer backbone (equivariant attention /
    # spherical-harmonic basis construction) is an external submodule with no
    # clean single-kernel Pallas equivalent; identity on type-'0' features here.
    # TODO(synk): once the backbone exists, fuse its final per-node projection /
    # LayerNorm into this head so the (B, N, D) activations never round-trip HBM.
    del coors, mask, adj_mat
    return feats


def prepare_head_params(w, b, *, lanes=LANES, dtype=jnp.float32):
    """Pad/cast the linear-head parameters ONCE at init time (not per forward).

    W is the dominant HBM tensor of this head (~180 KiB at D=32, C=1357); doing
    the pad/cast per call would add an XLA copy comparable to the kernel itself.
    """
    d, c = w.shape
    c_pad = _round_up(c, lanes)                                 # 1357 -> 1408
    w_p = jnp.pad(w.astype(dtype), ((0, 0), (0, c_pad - c)))
    b_p = jnp.pad(b.astype(dtype), (0, c_pad - c)).reshape(1, c_pad)
    return w_p, b_p


def se3_cleavage_forward(feats, coors, mask, adj_mat, w_p, b_p,
                         *, num_classes=NUM_CLASSES, max_block_b=MAX_BLOCK_B):
    """Se3CleavageModel.forward with pooling + head fused into one Pallas kernel.

    w_p / b_p must come from prepare_head_params (pre-padded, pre-cast).
    """
    feats0 = se3_backbone_stub(feats, coors, mask, adj_mat)     # (B, N, D)
    B, N, D = feats0.shape
    assert w_p.shape[0] == D
    C_pad = w_p.shape[1]

    f32 = jnp.float32
    feats_p = feats0.astype(f32)
    mask_p = mask.astype(f32)[:, :, None]                       # (B, N, 1)

    # Collapse the batch grid: one step at small B (per-step overhead dominates
    # there), tile only once the batch outgrows a single MXU-friendly pass.
    block_b = min(_round_up(B, 8), max_block_b)
    B_pad = _round_up(B, block_b)
    if B_pad != B:
        feats_p = jnp.pad(feats_p, ((0, B_pad - B), (0, 0), (0, 0)))
        mask_p = jnp.pad(mask_p, ((0, B_pad - B), (0, 0), (0, 0)))
    num_tiles = B_pad // block_b

    grid_spec = pltpu.PrefetchScalarGridSpec(
        num_scalar_prefetch=0,
        grid=(num_tiles,),
        in_specs=[
            pl.BlockSpec((block_b, N, D), lambda i: (i, 0, 0)),  # feats: streamed per tile
            pl.BlockSpec((block_b, N, 1), lambda i: (i, 0, 0)),  # mask:  streamed per tile
            pl.BlockSpec((D, C_pad), lambda i: (0, 0)),          # W: loaded once, resident
            pl.BlockSpec((1, C_pad), lambda i: (0, 0)),          # b: loaded once, resident
        ],
        out_specs=pl.BlockSpec((block_b, C_pad), lambda i: (i, 0)),
    )

    # Only shard batch tiles across TensorCores (v7x megacore) when there are
    # enough tiles to amortize replicating the resident W into both cores.
    dim_sem = ("parallel",) if num_tiles >= 8 else ("arbitrary",)

    # Advisory cost hint for the XLA scheduler.
    flops = 2 * B_pad * N * D + 2 * B_pad * D * C_pad
    bytes_accessed = 4 * (B_pad * N * D + B_pad * N + D * C_pad + C_pad
                          + B_pad * C_pad)

    logits_p = pl.pallas_call(
        _cleavage_head_kernel,
        out_shape=jax.ShapeDtypeStruct((B_pad, C_pad), f32),
        grid_spec=grid_spec,
        compiler_params=pltpu.CompilerParams(
            dimension_semantics=dim_sem,
            # Footprint here is < 1 MiB (double-buffered feats/mask/out +
            # resident W/b). 32 MiB leaves headroom yet stays inside v7x's
            # 64 MiB physical VMEM; re-budget before growing block_b/N:
            #   2*(block_b*N*D*4) + 2*(block_b*C_pad*4) + 2*(D*C_pad*4).
            vmem_limit_bytes=32 * 1024 * 1024,
        ),
        cost_estimate=pl.CostEstimate(
            flops=flops, transcendentals=0, bytes_accessed=bytes_accessed),
    )(feats_p, mask_p, w_p, b_p)

    return logits_p[:B, :num_classes]


def reference_forward(feats, coors, mask, adj_mat, w, b):
    """Pure-JAX reference for correctness check."""
    feats0 = se3_backbone_stub(feats, coors, mask, adj_mat)
    mask_f = mask.astype(jnp.float32)
    summed = jnp.sum(feats0 * mask_f[:, :, None], axis=1)
    counts = jnp.sum(mask_f, axis=1, keepdims=True)
    pooled = summed / jnp.maximum(counts, 1e-9)
    return pooled @ w + b[None, :]


if __name__ == "__main__":
    key = jax.random.PRNGKey(0)
    kf, kc, kw, kb, kl = jax.random.split(key, 5)

    # small shapes consistent with the module: batch=16, nodes(seq)=8, hidden=32
    B, N, D = 16, 8, 32

    feats = jax.random.normal(kf, (B, N, D), dtype=jnp.float32)
    coors = jax.random.normal(kc, (B, N, 3), dtype=jnp.float32)
    lengths = jax.random.randint(kl, (B,), 1, N + 1)
    mask = (jnp.arange(N)[None, :] < lengths[:, None]).astype(jnp.float32)
    adj_mat = jnp.zeros((B, N, N), dtype=jnp.float32)

    # deterministic parameter init for nn.Linear(dim=32, 1357)
    w = jax.random.normal(kw, (D, NUM_CLASSES), dtype=jnp.float32) * 0.02
    b = jax.random.normal(kb, (NUM_CLASSES,), dtype=jnp.float32) * 0.02

    # pad/cast the head parameters exactly once, at "init" time
    w_p, b_p = prepare_head_params(w, b)

    logits = se3_cleavage_forward(feats, coors, mask, adj_mat, w_p, b_p)
    logits = jax.block_until_ready(logits)

    ref = reference_forward(feats, coors, mask, adj_mat, w, b)
    assert logits.shape == (B, NUM_CLASSES)
    assert jnp.allclose(logits, ref, atol=1e-4, rtol=1e-4), "mismatch vs reference"

    print("KERNEL_OK")
</pallas_src>

<mosaic_0001>
module attributes {stable_mosaic.version = 11 : i64} {
  func.func @_cleavage_head_kernel(%arg0: i32, %arg1: memref<16x8x32xf32, #tpu.memory_space<vmem>>, %arg2: memref<16x8x1xf32, #tpu.memory_space<vmem>>, %arg3: memref<32x1408xf32, #tpu.memory_space<vmem>>, %arg4: memref<1x1408xf32, #tpu.memory_space<vmem>>, %arg5: memref<16x1408xf32, #tpu.memory_space<vmem>>) attributes {dimension_semantics = [#tpu.dimension_semantics<arbitrary>], iteration_bounds = array<i64: 1>, scalar_prefetch = 0 : i64, scratch_operands = 0 : i64, tpu.core_type = #tpu.core_type<tc>, window_params = [{transform_indices = @transform_0, window_bounds = array<i64: 16, 8, 32>}, {transform_indices = @transform_1, window_bounds = array<i64: 16, 8, 1>}, {pipeline_mode = #tpu.pipeline_mode<synchronous>, transform_indices = @transform_2, window_bounds = array<i64: 32, 1408>}, {pipeline_mode = #tpu.pipeline_mode<synchronous>, transform_indices = @transform_3, window_bounds = array<i64: 1, 1408>}, {transform_indices = @transform_4, window_bounds = array<i64: 16, 1408>}]} {
    %c0 = arith.constant 0 : index
    %c0_0 = arith.constant 0 : index
    %c0_1 = arith.constant 0 : index
    %0 = vector.load %arg2[%c0, %c0_0, %c0_1] : memref<16x8x1xf32, #tpu.memory_space<vmem>>, vector<16x8x1xf32>
    %cst = arith.constant dense<0.000000e+00> : vector<16x1xf32>
    %1 = vector.multi_reduction <add>, %0, %cst [1] : vector<16x8x1xf32> to vector<16x1xf32>
    %c0_2 = arith.constant 0 : index
    %c0_3 = arith.constant 0 : index
    %c0_4 = arith.constant 0 : index
    %2 = vector.load %arg1[%c0_2, %c0_3, %c0_4] : memref<16x8x32xf32, #tpu.memory_space<vmem>>, vector<16x8x32xf32>
    %3 = vector.broadcast %0 : vector<16x8x1xf32> to vector<16x8x32xf32>
    %4 = arith.mulf %2, %3 : vector<16x8x32xf32>
    %cst_5 = arith.constant dense<0.000000e+00> : vector<16x32xf32>
    %5 = vector.multi_reduction <add>, %4, %cst_5 [1] : vector<16x8x32xf32> to vector<16x32xf32>
    %cst_6 = arith.constant 1.000000e+00 : f32
    %6 = vector.broadcast %cst_6 : f32 to vector<16x1xf32>
    %7 = arith.maximumf %1, %6 : vector<16x1xf32>
    %8 = vector.broadcast %7 : vector<16x1xf32> to vector<16x32xf32>
    %9 = arith.divf %5, %8 : vector<16x32xf32>
    %c0_7 = arith.constant 0 : index
    %c0_8 = arith.constant 0 : index
    %10 = vector.load %arg3[%c0_7, %c0_8] : memref<32x1408xf32, #tpu.memory_space<vmem>>, vector<32x1408xf32>
    %cst_9 = arith.constant dense<0.000000e+00> : vector<16x1408xf32>
    %11 = tpu.matmul %9, %10, %cst_9 {dimension_numbers = #tpu.dot_dimension_numbers<[1], [0], [0], [1], [0, 0, 1, 1], [], []>} : vector<16x32xf32>, vector<32x1408xf32>, vector<16x1408xf32> -> vector<16x1408xf32>
    %c0_10 = arith.constant 0 : index
    %c0_11 = arith.constant 0 : index
    %12 = vector.load %arg4[%c0_10, %c0_11] : memref<1x1408xf32, #tpu.memory_space<vmem>>, vector<1x1408xf32>
    %13 = vector.broadcast %12 : vector<1x1408xf32> to vector<16x1408xf32>
    %14 = arith.addf %11, %13 : vector<16x1408xf32>
    %c0_12 = arith.constant 0 : index
    %c0_13 = arith.constant 0 : index
    %15 = vector.load %arg5[%c0_12, %c0_13] : memref<16x1408xf32, #tpu.memory_space<vmem>>, vector<16x1408xf32>
    tpu.vector_store %arg5[%c0_12, %c0_13], %14 {strides = array<i32>} : memref<16x1408xf32, #tpu.memory_space<vmem>>, vector<16x1408xf32>,
    return
  }
  func.func @transform_0(%arg0: i32) -> (i32, i32, i32) {
    %c0_i32 = arith.constant 0 : i32
    %c0_i32_0 = arith.constant 0 : i32
    %c0_i32_1 = arith.constant 0 : i32
    return %arg0, %c0_i32, %c0_i32_0 : i32, i32, i32
  }
  func.func @transform_1(%arg0: i32) -> (i32, i32, i32) {
    %c0_i32 = arith.constant 0 : i32
    %c0_i32_0 = arith.constant 0 : i32
    %c0_i32_1 = arith.constant 0 : i32
    return %arg0, %c0_i32, %c0_i32_0 : i32, i32, i32
  }
  func.func @transform_2(%arg0: i32) -> (i32, i32) {
    %c0_i32 = arith.constant 0 : i32
    %c0_i32_0 = arith.constant 0 : i32
    %c0_i32_1 = arith.constant 0 : i32
    return %c0_i32, %c0_i32_0 : i32, i32
  }
  func.func @transform_3(%arg0: i32) -> (i32, i32) {
    %c0_i32 = arith.constant 0 : i32
    %c0_i32_0 = arith.constant 0 : i32
    %c0_i32_1 = arith.constant 0 : i32
    return %c0_i32, %c0_i32_0 : i32, i32
  }
  func.func @transform_4(%arg0: i32) -> (i32, i32) {
    %c0_i32 = arith.constant 0 : i32
    %c0_i32_0 = arith.constant 0 : i32
    return %arg0, %c0_i32 : i32, i32
  }
}

</mosaic_0001>

<bundles_post_ra>
// kernel: tpu_custom_call.1
= control target key start
LH: loop header
LB: loop body
LE: loop exit
PB: predicated region body
PF: predicated region fallthrough
CT: control target
= control target key end

     0   :  { %9 = vsyncpa [#allocation3], 0  ;;  %s2066_s0 = inlined_call_operand.vmem [shape: f32[16,8,32], index: 0, kind: input, shape index: {}]   ;;  %s2067_s1 = inlined_call_operand.vmem [shape: f32[16,8,1], index: 1, kind: input, shape index: {}]   ;;  %s2068_s2 = inlined_call_operand.hbm [shape: f32[32,1408], index: 2, kind: input, shape index: {}]   ;;  %s2069_s3 = inlined_call_operand.hbm [shape: f32[1,1408], index: 3, kind: input, shape index: {}]   ;;  %s2070_s4 = inlined_call_operand.hbm [shape: f32[16,1408], index: 4, kind: output, shape index: {}]  }
   0x1   :  { %10 = vsyncpa [#allocation6], 0 }
   0x2   :  { %11 = vsyncpa [#allocation4], 0  ;;  %s20_s17 = sshll.u32 %s2068_s2, 4  ;;  %s1289_s18 = smov [#allocation2]   ;;  %s21_s17 = int_to_ptr.hbm [resolvable:$true] %s20_s17 }
   0x3   :  { %s22_s19 = sshll.u32 %s1289_s18, 4  ;;  %s34_s22 = sshll.u32 %s2069_s3, 4  ;;  %s23_s19 = int_to_ptr.vmem [resolvable:$true] %s22_s19  ;;  %s35_s22 = int_to_ptr.hbm [resolvable:$true] %s34_s22 }
   0x4   :  { %s1290_s23 = smov 1408   ;;  %s1291_s24 = smov 88  }
   0x5   :  { %28 = dma.hbm_to_vmem [thread:$0]  %s21_s17, 5632, %s23_s19, [#allocation3], %s1290_s23, %s1290_s23, %s1291_s24  }
   0x6   :  { %s1292_s25 = smov [#allocation5]  }
   0x7   :  { %s36_s26 = sshll.u32 %s1292_s25, 4  ;;  %s37_s26 = int_to_ptr.vmem [resolvable:$true] %s36_s26 }
   0x8   :  { %39 = dma.hbm_to_vmem [thread:$0]  %s35_s22, 176, %s37_s26, [#allocation6]  }
   0x9   :  { %1283 = dma.done.wait [#allocation3], 5632  }
   0xa   :  { %1284 = vsyncadd [#allocation3], 4294961664 }
   0xb   :  { %1285 = dma.done.wait [#allocation6], 176  }
   0xc   :  { %1286 = vsyncadd [#allocation6], 4294967120  ;;  %v1293_v0 = vmov 0   ;;  %vm64_vm0 = vcmask 7168   ;;  %v49_v1 = vld [vmem:[%s2067_s1 + $0x8] sm:$0xff]  ;;  %v50_v2 = vld [vmem:[%s2067_s1 + $0x10] sm:$0xff] }
   0xd   :  { %1177 = vset.pattern.permute.xlu2 %v1293_v0  ;;  %1178 = vset.pattern.permute.xlu0 %v1293_v0  ;;  %v48_v3 = vld [vmem:[%s2067_s1] sm:$0xff]  ;;  %v72_v4 = vsel %vm64_vm0, %v49_v1, 0.0  ;;  %v79_v5 = vsel %vm64_vm0, %v50_v2, 0.0  ;;  %v51_v7 = vld [vmem:[%s2067_s1 + $0x18] sm:$0xff]  ;;  %v1352_v9 = vld [vmem:[%s2067_s1 + $0x30] sm:$0xff]  ;;  %vm289_vm1 = vcmask 261120  }
   0xe   :  { %1176 = vset.pattern.permute.xlu1 %v1293_v0  ;;  %200 = vperm.xlu2 %1177, %v49_v1   ;;  %v65_v6 = vsel %vm64_vm0, %v48_v3, 0.0  ;;  %v1347_v8 = vld [vmem:[%s2067_s1 + $0x20] sm:$0xff]  ;;  %v73_v10 = vrot.slane %v72_v4, 4  ;;  %v80_v11 = vrot.slane %v79_v5, 4  ;;  %v86_v13 = vsel %vm64_vm0, %v51_v7, 0.0  ;;  %v1358_v14 = vld [vmem:[%s2067_s1 + $0x28] sm:$0xff] }
   0xf   :  { %205 = vperm.xlu0 %1178, %v50_v2   ;;  %195 = vperm.xlu1 %1176, %v48_v3   ;;  %v66_v12 = vrot.slane %v65_v6, 4  ;;  %v87_v15 = vrot.slane %v86_v13, 4  ;;  %v93_v16 = vsel %vm64_vm0, %v1347_v8, 0.0  ;;  %v107_v17 = vsel %vm64_vm0, %v1352_v9, 0.0  ;;  %v1369_v23 = vld [vmem:[%s2067_s1 + $0x38] sm:$0xff]  ;;  %v1376_v54 = vld [vmem:[%s2067_s1 + $0x48] sm:$0xff] }
  0x10   :  { %v100_v18 = vsel %vm64_vm0, %v1358_v14, 0.0  ;;  %v74_v19 = vadd.f32 %v73_v10, %v72_v4  ;;  %v81_v20 = vadd.f32 %v80_v11, %v79_v5  ;;  %v94_v22 = vrot.slane %v93_v16, 4  ;;  %v1381_v57 = vld [vmem:[%s2067_s1 + $0x40] sm:$0xff]  ;;  %s1130_s12 = sshll.u32 %s2070_s4, 4  ;;  %s1131_s12 = int_to_ptr.hbm [resolvable:$true] %s1130_s12 }
  0x11   :  { %v67_v21 = vadd.f32 %v66_v12, %v65_v6  ;;  %v88_v24 = vadd.f32 %v87_v15, %v86_v13  ;;  %v108_v25 = vrot.slane %v107_v17, 4  ;;  %v101_v26 = vrot.slane %v100_v18, 4  ;;  %v1390_v13 = vld [vmem:[%s2067_s1 + $0x50] sm:$0xff]  ;;  %v1395_v15 = vld [vmem:[%s2067_s1 + $0x60] sm:$0xff] }
  0x12   :  { %v75_v27 = vrot.slane %v74_v19, 2  ;;  %v82_v28 = vrot.slane %v81_v20, 2  ;;  %v95_v30 = vadd.f32 %v94_v22, %v93_v16  ;;  %v114_v34 = vsel %vm64_vm0, %v1369_v23, 0.0 }
  0x13   :  { %v68_v29 = vrot.slane %v67_v21, 2  ;;  %v89_v31 = vrot.slane %v88_v24, 2  ;;  %v109_v32 = vadd.f32 %v108_v25, %v107_v17  ;;  %v102_v33 = vadd.f32 %v101_v26, %v100_v18 }
  0x14   :  { %v76_v35 = vadd.f32 %v75_v27, %v74_v19  ;;  %v83_v36 = vadd.f32 %v82_v28, %v81_v20  ;;  %v96_v38 = vrot.slane %v95_v30, 2  ;;  %v115_v47 = vrot.slane %v114_v34, 4 }
  0x15   :  { %v69_v37 = vadd.f32 %v68_v29, %v67_v21  ;;  %v90_v39 = vadd.f32 %v89_v31, %v88_v24  ;;  %v110_v40 = vrot.slane %v109_v32, 2  ;;  %v103_v46 = vrot.slane %v102_v33, 2  ;;  %v1404_v29 = vld [vmem:[%s2067_s1 + $0x58] sm:$0xff] }
  0x16   :  { %210 = vperm.xlu2 %1177, %v51_v7   ;;  %v84_v41 = vrot.slane %v83_v36, 1  ;;  %v97_v43 = vadd.f32 %v96_v38, %v95_v30  ;;  %v77_v51 = vrot.slane %v76_v35, 1  ;;  %v116_v59 = vadd.f32 %v115_v47, %v114_v34 }
  0x17   :  { %v70_v42 = vrot.slane %v69_v37, 1  ;;  %v91_v44 = vrot.slane %v90_v39, 1  ;;  %v111_v45 = vadd.f32 %v110_v40, %v109_v32  ;;  %v104_v62 = vadd.f32 %v103_v46, %v102_v33 }
  0x18   :  { %v85_v48 = vadd.f32 %v84_v41, %v83_v36  ;;  %v98_v50 = vrot.slane %v97_v43, 1  ;;  %v78_v61 = vadd.f32 %v77_v51, %v76_v35  ;;  %v128_v63 = vsel %vm64_vm0, %v1376_v54, 0.0 }
  0x19   :  { %v71_v49 = vadd.f32 %v70_v42, %v69_v37  ;;  %v92_v52 = vadd.f32 %v91_v44, %v90_v39  ;;  %v112_v53 = vrot.slane %v111_v45, 1  ;;  %v129_v1 = vrot.slane %v128_v63, 4  ;;  %v63_v42 = vld [vmem:[%s2067_s1 + $0x78] sm:$0xff] }
  0x1a   :  { %v404_v55 = vmax.f32 %v85_v48, 1.0  ;;  %v99_v60 = vadd.f32 %v98_v50, %v97_v43  ;;  %v121_v2 = vsel %vm64_vm0, %v1381_v57, 0.0  ;;  %v117_v3 = vrot.slane %v116_v59, 2 }
  0x1b   :  { %v402_v56 = vmax.f32 %v71_v49, 1.0  ;;  %v405_v58 = vmax.f32 %v92_v52, 1.0  ;;  %v113_v0 = vadd.f32 %v112_v53, %v111_v45  ;;  %v130_v4 = vadd.f32 %v129_v1, %v128_v63 }
  0x1c   :  { %430 = vperm.xlu1 %1176, %v404_v55   ;;  %v406_v5 = vmax.f32 %v99_v60, 1.0  ;;  %v403_v6 = vmax.f32 %v78_v61, 1.0  ;;  %v105_v7 = vrot.slane %v104_v62, 1  ;;  %v122_v10 = vrot.slane %v121_v2, 4  ;;  %v62_v55 = vld [vmem:[%s2067_s1 + $0x70] sm:$0xff] }
  0x1d   :  { %420 = vperm.xlu0 %1178, %v402_v56   ;;  %v408_v11 = vmax.f32 %v113_v0, 1.0  ;;  %v131_v12 = vrot.slane %v130_v4, 2  ;;  %v118_v17 = vadd.f32 %v117_v3, %v116_v59  ;;  %v135_v20 = vsel %vm64_vm0, %v1390_v13, 0.0 }
  0x1e   :  { %435 = vperm.xlu2 %1177, %v405_v58   ;;  %v106_v16 = vadd.f32 %v105_v7, %v104_v62  ;;  %v123_v18 = vadd.f32 %v122_v10, %v121_v2  ;;  %v149_v21 = vsel %vm64_vm0, %v1395_v15, 0.0  ;;  %v136_v26 = vrot.slane %v135_v20, 4 }
  0x1f   :  { %v132_v19 = vadd.f32 %v131_v12, %v130_v4  ;;  %v119_v24 = vrot.slane %v118_v17, 1  ;;  %v150_v28 = vrot.slane %v149_v21, 4  ;;  %v142_v35 = vsel %vm64_vm0, %v1404_v29, 0.0 }
  0x20   :  { %v407_v22 = vmax.f32 %v106_v16, 1.0  ;;  %v124_v25 = vrot.slane %v123_v18, 2  ;;  %v137_v32 = vadd.f32 %v136_v26, %v135_v20  ;;  %v143_v39 = vrot.slane %v142_v35, 4  ;;  %v178_v26 = vld [vmem:[%s2066_s0 + $0x8] sm:$0xff] }
  0x21   :  { %v133_v27 = vrot.slane %v132_v19, 1  ;;  %v120_v30 = vadd.f32 %v119_v24, %v118_v17  ;;  %v151_v34 = vadd.f32 %v150_v28, %v149_v21  ;;  %v170_v47 = vsel %vm64_vm0, %v63_v42, 0.0 }
  0x22   :  { %v125_v31 = vadd.f32 %v124_v25, %v123_v18  ;;  %v138_v38 = vrot.slane %v137_v32, 2  ;;  %v144_v44 = vadd.f32 %v143_v39, %v142_v35  ;;  %v171_v53 = vrot.slane %v170_v47, 4  ;;  %v183_v39 = vld [vmem:[%s2066_s0 + $0x30] sm:$0xff] }
  0x23   :  { %v134_v33 = vadd.f32 %v133_v27, %v132_v19  ;;  %v409_v36 = vmax.f32 %v120_v30, 1.0  ;;  %v152_v41 = vrot.slane %v151_v34, 2  ;;  %v163_v61 = vsel %vm64_vm0, %v62_v55, 0.0 }
  0x24   :  { %440 = vperm.xlu1 %1176, %v406_v5   ;;  %v126_v37 = vrot.slane %v125_v31, 1  ;;  %v139_v43 = vadd.f32 %v138_v38, %v137_v32  ;;  %v145_v50 = vrot.slane %v144_v44, 2  ;;  %v172_v60 = vadd.f32 %v171_v53, %v170_v47  ;;  %v177_v32 = vld [vmem:[%s2066_s0] sm:$0xff] }
  0x25   :  { %425 = vperm.xlu0 %1178, %v403_v6   ;;  %v411_v40 = vmax.f32 %v134_v33, 1.0  ;;  %v153_v45 = vadd.f32 %v152_v41, %v151_v34  ;;  %v164_v1 = vrot.slane %v163_v61, 4 }
  0x26   :  { %450 = vperm.xlu2 %1177, %v408_v11   ;;  %v140_v49 = vrot.slane %v139_v43, 1  ;;  %v146_v56 = vadd.f32 %v145_v50, %v144_v44  ;;  %v173_v3 = vrot.slane %v172_v60, 2 }
  0x27   :  { %v154_v52 = vrot.slane %v153_v45, 1  ;;  %v165_v5 = vadd.f32 %v164_v1, %v163_v61 }
  0x28   :  { %v147_v63 = vrot.slane %v146_v56, 1  ;;  %v174_v6 = vadd.f32 %v173_v3, %v172_v60 }
  0x29   :  { %v155_v59 = vadd.f32 %v154_v52, %v153_v45  ;;  %v166_v10 = vrot.slane %v165_v5, 2 }
  0x2a   :  { %v148_v4 = vadd.f32 %v147_v63, %v146_v56  ;;  %v175_v11 = vrot.slane %v174_v6, 1 }
  0x2b   :  { %v414_v2 = vmax.f32 %v155_v59, 1.0  ;;  %v167_v16 = vadd.f32 %v166_v10, %v165_v5 }
  0x2c   :  { %215 = vperm.xlu1 %1176, %v1347_v8   ;;  %v61_v8 = vld [vmem:[%s2067_s1 + $0x68] sm:$0xff]  ;;  %v413_v7 = vmax.f32 %v148_v4, 1.0  ;;  %v176_v17 = vadd.f32 %v175_v11, %v174_v6 }
  0x2d   :  { %445 = vperm.xlu0 %1178, %v407_v22   ;;  %v156_v46 = vsel %vm64_vm0, %v61_v8, 0.0 }
  0x2e   :  { %225 = vperm.xlu2 %1177, %v1352_v9   ;;  %v127_v9 = vadd.f32 %v126_v37, %v125_v31  ;;  %v157_v51 = vrot.slane %v156_v46, 4  ;;  %v417_v19 = vmax.f32 %v176_v17, 1.0 }
  0x30   :  { %v410_v48 = vmax.f32 %v127_v9, 1.0  ;;  %v158_v58 = vadd.f32 %v157_v51, %v156_v46 }
  0x32   :  { %v159_v0 = vrot.slane %v158_v58, 2 }
  0x34   :  { %455 = vperm.xlu1 %1176, %v409_v36  }
  0x35   :  { %220 = vperm.xlu0 %1178, %v1358_v14   ;;  %v141_v14 = vadd.f32 %v140_v49, %v139_v43 }
  0x36   :  { %465 = vperm.xlu2 %1177, %v411_v40  }
  0x37   :  { %v412_v62 = vmax.f32 %v141_v14, 1.0 }
  0x3c   :  { %460 = vperm.xlu1 %1176, %v410_v48  }
  0x3d   :  { %230 = vperm.xlu0 %1178, %v1369_v23   ;;  %v160_v23 = vadd.f32 %v159_v0, %v158_v58 }
  0x3e   :  { %240 = vperm.xlu2 %1177, %v1376_v54  }
  0x3f   :  { %v161_v54 = vrot.slane %v160_v23, 1 }
  0x41   :  { %v162_v12 = vadd.f32 %v161_v54, %v160_v23 }
  0x43   :  { %v415_v18 = vmax.f32 %v162_v12, 1.0 }
  0x44   :  { %235 = vperm.xlu1 %1176, %v1381_v57   ;;  %v168_v57 = vrot.slane %v167_v16, 1 }
  0x45   :  { %470 = vperm.xlu0 %1178, %v412_v62  }
  0x46   :  { %480 = vperm.xlu2 %1177, %v414_v2   ;;  %v169_v20 = vadd.f32 %v168_v57, %v167_v16 }
  0x48   :  { %v416_v21 = vmax.f32 %v169_v20, 1.0 }
  0x4c   :  { %245 = vperm.xlu1 %1176, %v1390_v13  }
  0x4d   :  { %475 = vperm.xlu0 %1178, %v413_v7  }
  0x4e   :  { %255 = vperm.xlu2 %1177, %v1395_v15   ;;  %v180_v15 = vld [vmem:[%s2066_s0 + $0x18] sm:$0xff] }
  0x54   :  { %485 = vperm.xlu1 %1176, %v415_v18  }
  0x55   :  { %250 = vperm.xlu0 %1178, %v1404_v29   ;;  %v179_v29 = vld [vmem:[%s2066_s0 + $0x10] sm:$0xff] }
  0x56   :  { %495 = vperm.xlu2 %1177, %v417_v19  }
  0x5c   :  { %260 = vperm.xlu1 %1176, %v61_v8  }
  0x5d   :  { %490 = vperm.xlu0 %1178, %v416_v21  }
  0x64   :  { %270 = vperm.xlu1 %1176, %v63_v42  }
  0x65   :  { %265 = vperm.xlu0 %1178, %v62_v55  }
  0x68   :  { %v201_v13 = vpop.permute.xlu2 %200 }
  0x69   :  { %v274_v28 = vmul.f32 %v201_v13, %v178_v26 }
  0x6b   :  { %v297_v36 = vsel %vm289_vm1, %v274_v28, 0.0 }
  0x6c   :  { %v298_v8 = vrot.slane %v297_v36, 4 }
  0x6e   :  { %v299_v47 = vadd.f32 %v298_v8, %v297_v36  ;;  %v740_v8 = vld [vmem:[#allocation2 + $0x10] sm:$0xff] }
  0x70   :  { %v211_v22 = vpop.permute.xlu2 %210  ;;  %v300_v59 = vrot.slane %v299_v47, 2 }
  0x71   :  { %v276_v27 = vmul.f32 %v211_v22, %v180_v15 }
  0x72   :  { %v301_v7 = vadd.f32 %v300_v59, %v299_v47 }
  0x73   :  { %v311_v31 = vsel %vm289_vm1, %v276_v27, 0.0  ;;  %v186_v27 = vld [vmem:[%s2066_s0 + $0x48] sm:$0xff] }
  0x74   :  { %v312_v37 = vrot.slane %v311_v31, 4  ;;  %v302_v19 = vrot.slane %v301_v7, 1 }
  0x76   :  { %v313_v43 = vadd.f32 %v312_v37, %v311_v31 }
  0x78   :  { %v436_v24 = vpop.permute.xlu2 %435  ;;  %v314_v52 = vrot.slane %v313_v43, 2 }
  0x79   :  { %1179 = vrcp.f32 %v436_v24  ;;  %vm548_vm2 = vweird.f32 %v436_v24  ;;  %v552_v63 = vand.u32 2147483647, %v436_v24  ;;  %v554_v0 = vand.u32 2147483648, %v436_v24 }
  0x7a   :  { %v315_v61 = vadd.f32 %v314_v52, %v313_v43 }
  0x7b   :  { %vm553_vm5 = vcmp.eq.f32.partialorder %v552_v63, 8.507059e+37  ;;  %v555_v11 = vor.u32 1.1754944e-38, %v554_v0 }
  0x7c   :  { %v316_v54 = vrot.slane %v315_v61, 1 }
  0x7e   :  { %v317_v20 = vadd.f32 %v316_v54, %v315_v61  ;;  %v772_v61 = vld [vmem:[#allocation2 + $0x110] sm:$0xff]  ;;  %v761_v54 = vld [vmem:[#allocation2 + $0xb8] sm:$0xff] }
  0x7f   :  { %v1444_v34 = vpop.eup %1179  ;;  %884 = vmatpush.msra.mxu1 %v772_v61 }
  0x80   :  { %v1432_v25 = vpop.permute.xlu2 %450  ;;  %v544_v41 = vmul.f32 %v1444_v34, %v436_v24  ;;  %vm549_vm3 = vweird.f32 %v1444_v34 }
  0x81   :  { %v206_v30 = vpop.permute.xlu0 %205  ;;  %v196_v33 = vpop.permute.xlu1 %195  ;;  %1181 = vrcp.f32 %v1432_v25  ;;  %vm1469_vm4 = vmor %vm548_vm2, %vm549_vm3  ;;  %vm593_vm6 = vweird.f32 %v1432_v25  ;;  %v597_v15 = vand.u32 2147483647, %v1432_v25  ;;  %v599_v26 = vand.u32 2147483648, %v1432_v25  ;;  %885 = vmatpush.msra.mxu1 %v761_v54 }
  0x82   :  { %v275_v35 = vmul.f32 %v206_v30, %v179_v29  ;;  %v273_v38 = vmul.f32 %v196_v33, %v177_v32  ;;  %v545_v45 = vsub.f32 1.0, %v544_v41 }
  0x83   :  { %vm1522_vm9 = vcmp.eq.f32.partialorder %v597_v15, 8.507059e+37  ;;  %v751_v15 = vld [vmem:[#allocation2 + $0x68] sm:$0xff] }
  0x84   :  { %v304_v42 = vsel %vm289_vm1, %v275_v35, 0.0  ;;  %v290_v44 = vsel %vm289_vm1, %v273_v38, 0.0  ;;  %v546_v55 = vmul.f32 %v1444_v34, %v545_v45 }
  0x85   :  { %v305_v46 = vrot.slane %v304_v42, 4  ;;  %v291_v48 = vrot.slane %v290_v44, 4 }
  0x86   :  { %v547_v1 = vadd.f32 %v1444_v34, %v546_v55 }
  0x87   :  { %v1459_v53 = vpop.eup %1181  ;;  %v306_v14 = vadd.f32 %v305_v46, %v304_v42  ;;  %v292_v60 = vadd.f32 %v291_v48, %v290_v44 }
  0x88   :  { %v226_v40 = vpop.permute.xlu2 %225  ;;  %v589_v62 = vmul.f32 %v1459_v53, %v1432_v25  ;;  %v551_v12 = vsel %vm1469_vm4, %v1444_v34, %v547_v1  ;;  %vm594_vm7 = vweird.f32 %v1459_v53 }
  0x89   :  { %v279_v9 = vmul.f32 %v226_v40, %v183_v39  ;;  %v307_v2 = vrot.slane %v306_v14, 2  ;;  %v293_v23 = vrot.slane %v292_v60, 2  ;;  %v556_v24 = vsel %vm553_vm5, %v555_v11, %v551_v12  ;;  %v181_v39 = vld [vmem:[%s2066_s0 + $0x20] sm:$0xff]  ;;  %vm1518_vm8 = vmor %vm593_vm6, %vm594_vm7 }
  0x8a   :  { %v590_v10 = vsub.f32 1.0, %v589_v62  ;;  %v1510_v40 = vadd.f32 %v302_v19, %v301_v7  ;;  %v1512_v41 = vmul.f32 %v556_v24, %v317_v20  ;;  %v773_v62 = vld [vmem:[#allocation2 + $0x118] sm:$0xff]  ;;  %v760_v7 = vld [vmem:[#allocation2 + $0xb0] sm:$0xff]  ;;  %v750_v24 = vld [vmem:[#allocation2 + $0x60] sm:$0xff] }
  0x8b   :  { %v332_v49 = vsel %vm289_vm1, %v279_v9, 0.0  ;;  %v308_v16 = vadd.f32 %v307_v2, %v306_v14  ;;  %v294_v57 = vadd.f32 %v293_v23, %v292_v60  ;;  %v600_v9 = vor.u32 1.1754944e-38, %v599_v26  ;;  %v771_v60 = vld [vmem:[#allocation2 + $0x108] sm:$0xff]  ;;  %907 = vmatpush.msra.mxu2 %v773_v62  ;;  %886 = vmatpush.msra.mxu1 %v750_v24  ;;  %v742_v26 = vld [vmem:[#allocation2 + $0x20] sm:$0xff] }
  0x8c   :  { %v333_v56 = vrot.slane %v332_v49, 4  ;;  %v591_v21 = vmul.f32 %v1459_v53, %v590_v10  ;;  %861 = vmatpush.msra.mxu0 %v771_v60  ;;  %v762_v10 = vld [vmem:[#allocation2 + $0xc0] sm:$0xff]  ;;  %1166 = vmatpush.msra.mxu3 %v771_v60 }
  0x8d   :  { %v309_v28 = vrot.slane %v308_v16, 1  ;;  %v295_v32 = vrot.slane %v294_v57, 1  ;;  %908 = vmatpush.msra.mxu2 %v762_v10  ;;  %v753_v10 = vld [vmem:[#allocation2 + $0x78] sm:$0xff] }
  0x8e   :  { %v1455_v50 = vpop.permute.xlu1 %430  ;;  %v334_v3 = vadd.f32 %v333_v56, %v332_v49  ;;  %v592_v36 = vadd.f32 %v1459_v53, %v591_v21  ;;  %862 = vmatpush.msra.mxu0 %v760_v7  ;;  %1167 = vmatpush.msra.mxu3 %v760_v7 }
  0x8f   :  { %v1457_v51 = vpop.permute.xlu0 %420  ;;  %1183 = vrcp.f32 %v1455_v50  ;;  %v1526_v43 = vadd.f32 %v309_v28, %v308_v16  ;;  %v1530_v47 = vadd.f32 %v295_v32, %v294_v57  ;;  %v537_v25 = vand.u32 2147483647, %v1455_v50  ;;  %909 = vmatpush.msra.mxu2 %v751_v15 }
  0x90   :  { %v1462_v58 = vpop.permute.xlu2 %465  ;;  %1185 = vrcp.f32 %v1457_v51  ;;  %v335_v17 = vrot.slane %v334_v3, 2  ;;  %v596_v55 = vsel %vm1518_vm8, %v1459_v53, %v592_v36  ;;  %v539_v14 = vand.u32 2147483648, %v1455_v50 }
  0x91   :  { %1187 = vrcp.f32 %v1462_v58  ;;  %v507_v63 = vand.u32 2147483647, %v1457_v51  ;;  %v509_v0 = vand.u32 2147483648, %v1457_v51  ;;  %v644_v1 = vand.u32 2147483648, %v1462_v58  ;;  %910 = vmatpush.msra.mxu2 %v740_v8 }
  0x92   :  { %v336_v29 = vadd.f32 %v335_v17, %v334_v3  ;;  %vm533_vm10 = vweird.f32 %v1455_v50  ;;  %v601_v19 = vsel %vm1522_vm9, %v600_v9, %v596_v55  ;;  %v1562_v20 = vor.u32 1.1754944e-38, %v539_v14  ;;  %v775_v55 = vld [vmem:[#allocation2 + $0x128] sm:$0xff] }
  0x93   :  { %vm503_vm11 = vweird.f32 %v1457_v51  ;;  %vm1567_vm13 = vcmp.eq.f32.partialorder %v537_v25, 8.507059e+37  ;;  %vm638_vm14 = vweird.f32 %v1462_v58  ;;  %v642_v28 = vand.u32 2147483647, %v1462_v58 }
  0x94   :  { %v337_v44 = vrot.slane %v336_v29, 1  ;;  %vm1578_vm15 = vcmp.eq.f32.partialorder %v507_v63, 8.507059e+37  ;;  %v1582_v36 = vor.u32 1.1754944e-38, %v644_v1 }
  0x95   :  { %v1483_v18 = vpop.eup %1183  ;;  %vm1612_vm5 = vcmp.eq.f32.partialorder %v642_v28, 8.507059e+37 }
  0x96   :  { %v1474_v5 = vpop.permute.xlu1 %440  ;;  %v1487_v22 = vpop.eup %1185  ;;  %v529_v30 = vmul.f32 %v1483_v18, %v1455_v50  ;;  %v338_v2 = vadd.f32 %v337_v44, %v336_v29  ;;  %vm534_vm12 = vweird.f32 %v1483_v18 }
  0x97   :  { %v1476_v6 = vpop.permute.xlu0 %425  ;;  %v1498_v31 = vpop.eup %1187  ;;  %v499_v37 = vmul.f32 %v1487_v22, %v1457_v51  ;;  %vm504_vm0 = vweird.f32 %v1487_v22  ;;  %v567_v25 = vand.u32 2147483647, %v1474_v5  ;;  %vm1601_vm2 = vmor %vm533_vm10, %vm534_vm12  ;;  %vm563_vm4 = vweird.f32 %v1474_v5 }
  0x98   :  { %1189 = vrcp.f32 %v1476_v6  ;;  %v241_v13 = vpop.permute.xlu2 %240  ;;  %v530_v45 = vsub.f32 1.0, %v529_v30  ;;  %v1535_v48 = vmul.f32 %v1498_v31, %v1462_v58  ;;  %v1575_v30 = vmul.f32 %v601_v19, %v338_v2  ;;  %vm1624_vm7 = vmor %vm503_vm11, %vm504_vm0 }
  0x99   :  { %1191 = vrcp.f32 %v1474_v5  ;;  %v282_v38 = vmul.f32 %v241_v13, %v186_v27  ;;  %v500_v56 = vsub.f32 1.0, %v499_v37  ;;  %v749_v13 = vld [vmem:[#allocation2 + $0x58] sm:$0xff]  ;;  %v1571_v27 = vor.u32 1.1754944e-38, %v509_v0  ;;  %v764_v0 = vld [vmem:[#allocation2 + $0xd0] sm:$0xff] }
  0x9a   :  { %v531_v53 = vmul.f32 %v1483_v18, %v530_v45  ;;  %v635_v11 = vsub.f32 1.0, %v1535_v48  ;;  %863 = vmatpush.msra.mxu0 %v749_v13  ;;  %1168 = vmatpush.msra.mxu3 %v749_v13  ;;  %v522_v48 = vand.u32 2147483647, %v1476_v6  ;;  %vm639_vm3 = vweird.f32 %v1498_v31 }
  0x9b   :  { %v353_v59 = vsel %vm289_vm1, %v282_v38, 0.0  ;;  %v501_v21 = vmul.f32 %v1487_v22, %v500_v56  ;;  %v738_v38 = vld [vmem:[#allocation2] sm:$0xff]  ;;  %v569_v56 = vand.u32 2147483648, %v1474_v5  ;;  %vm518_vm8 = vweird.f32 %v1476_v6  ;;  %vm1661_vm0 = vmor %vm638_vm14, %vm639_vm3 }
  0x9c   :  { %v354_v16 = vrot.slane %v353_v59, 4  ;;  %v532_v32 = vadd.f32 %v1483_v18, %v531_v53  ;;  %v636_v9 = vmul.f32 %v1498_v31, %v635_v11  ;;  %864 = vmatpush.msra.mxu0 %v738_v38  ;;  %1169 = vmatpush.msra.mxu3 %v738_v38  ;;  %vm1636_vm9 = vcmp.eq.f32.partialorder %v522_v48, 8.507059e+37 }
  0x9d   :  { %vm824_vm12 = vcmask 1041409   ;;  %vm828_vm3 = vcmask 1043459  }
  0x9e   :  { %v216_v33 = vpop.permute.xlu1 %215  ;;  %v1502_v35 = vpop.eup %1189  ;;  %v355_v45 = vadd.f32 %v354_v16, %v353_v59  ;;  %v524_v59 = vand.u32 2147483648, %v1476_v6  ;;  %953 = vmatpush.msrb.mxu0 %v775_v55  ;;  %v536_v61 = vsel %vm1601_vm2, %v1483_v18, %v532_v32  ;;  %v637_v18 = vadd.f32 %v1498_v31, %v636_v9 }
  0x9f   :  { %v1500_v34 = vpop.permute.xlu0 %445  ;;  %v514_v46 = vmul.f32 %v1502_v35, %v1476_v6  ;;  %v277_v49 = vmul.f32 %v216_v33, %v181_v39  ;;  %v1537_v52 = vpop.eup %1191  ;;  %v739_v39 = vld [vmem:[#allocation2 + $0x8] sm:$0xff]  ;;  %vm519_vm6 = vweird.f32 %v1502_v35  ;;  %vm1665_vm2 = vcmp.eq.f32.partialorder %v567_v25, 8.507059e+37 }
  0xa0   :  { %1193 = vrcp.f32 %v1500_v34  ;;  %v1550_v23 = vpop.permute.xlu2 %480  ;;  %v1556_v12 = vmul.f32 %v1537_v52, %v1474_v5  ;;  %887 = vmatpush.msra.mxu1 %v739_v39  ;;  %v356_v53 = vrot.slane %v355_v45, 2  ;;  %954 = vmatpush.msrb.mxu0 %v764_v0  ;;  %vm564_vm10 = vweird.f32 %v1537_v52  ;;  %vm1646_vm11 = vmor %vm518_vm8, %vm519_vm6 }
  0xa1   :  { %v515_v3 = vsub.f32 1.0, %v514_v46  ;;  %v318_v4 = vsel %vm289_vm1, %v277_v49, 0.0  ;;  %v502_v46 = vadd.f32 %v1487_v22, %v501_v21  ;;  %v182_v49 = vld [vmem:[%s2066_s0 + $0x28] sm:$0xff]  ;;  %v541_v21 = vsel %vm1567_vm13, %v1562_v20, %v536_v61  ;;  %vm1692_vm14 = vmor %vm563_vm4, %vm564_vm10 }
  0xa2   :  { %v319_v29 = vrot.slane %v318_v4, 4  ;;  %v560_v44 = vsub.f32 1.0, %v1556_v12  ;;  %955 = vmatpush.msrb.mxu0 %v753_v10  ;;  %v641_v58 = vsel %vm1661_vm0, %v1498_v31, %v637_v18  ;;  %vm826_vm13 = vcmask 1042434  }
  0xa3   :  { %v516_v37 = vmul.f32 %v1502_v35, %v515_v3  ;;  %v506_v54 = vsel %vm1624_vm7, %v1487_v22, %v502_v46  ;;  %v525_v22 = vor.u32 1.1754944e-38, %v524_v59  ;;  %v582_v38 = vand.u32 2147483647, %v1500_v34 }
  0xa4   :  { %v320_v60 = vadd.f32 %v319_v29, %v318_v4  ;;  %v561_v2 = vmul.f32 %v1537_v52, %v560_v44  ;;  %v511_v20 = vsel %vm1578_vm15, %v1571_v27, %v506_v54  ;;  %956 = vmatpush.msrb.mxu0 %v742_v26  ;;  %v542_v9 = vmul.f32 %v541_v21, %v1526_v43 }
  0xa5   :  { %v517_v62 = vadd.f32 %v1502_v35, %v516_v37  ;;  %v357_v37 = vadd.f32 %v356_v53, %v355_v45  ;;  %v570_v33 = vor.u32 1.1754944e-38, %v569_v56  ;;  %v512_v45 = vmul.f32 %v511_v20, %v1530_v47 }
  0xa6   :  { %v1558_v17 = vpop.permute.xlu1 %455  ;;  %v1585_v42 = vpop.eup %1193  ;;  %v321_v6 = vrot.slane %v320_v60, 2  ;;  %v562_v32 = vadd.f32 %v1537_v52, %v561_v2  ;;  %v584_v43 = vand.u32 2147483648, %v1500_v34  ;;  %v1707_v5 = vsel %vm1612_vm5, %v1582_v36, %v641_v58 }
  0xa7   :  { %v221_v57 = vpop.permute.xlu0 %220  ;;  %1195 = vrcp.f32 %v1558_v17  ;;  %v574_v63 = vmul.f32 %v1585_v42, %v1500_v34  ;;  %v521_v15 = vsel %vm1646_vm11, %v1502_v35, %v517_v62  ;;  %v358_v55 = vrot.slane %v357_v37, 1 }
  0xa8   :  { %v278_v3 = vmul.f32 %v221_v57, %v182_v49  ;;  %1197 = vrcp.f32 %v1550_v23  ;;  %v189_v57 = vld [vmem:[%s2066_s0 + $0x60] sm:$0xff]  ;;  %v256_v19 = vpop.permute.xlu2 %255  ;;  %v526_v27 = vsel %vm1636_vm9, %v525_v22, %v521_v15  ;;  %v322_v44 = vadd.f32 %v321_v6, %v320_v60  ;;  %v184_v49 = vld [vmem:[%s2066_s0 + $0x38] sm:$0xff] }
  0xa9   :  { %v575_v28 = vsub.f32 1.0, %v574_v63  ;;  %v285_v8 = vmul.f32 %v256_v19, %v189_v57  ;;  %v566_v47 = vsel %vm1692_vm14, %v1537_v52, %v562_v32  ;;  %vm578_vm15 = vweird.f32 %v1500_v34  ;;  %v185_v57 = vld [vmem:[%s2066_s0 + $0x40] sm:$0xff] }
  0xaa   :  { %v325_v16 = vsel %vm289_vm1, %v278_v3, 0.0  ;;  %v527_v59 = vmul.f32 %v526_v27, %v1510_v40  ;;  %vm1713_vm4 = vcmp.eq.f32.partialorder %v582_v38, 8.507059e+37  ;;  %v323_v50 = vrot.slane %v322_v44, 1  ;;  %v187_v38 = vld [vmem:[%s2066_s0 + $0x50] sm:$0xff] }
  0xab   :  { %v326_v29 = vrot.slane %v325_v16, 4  ;;  %v576_v25 = vmul.f32 %v1585_v42, %v575_v28  ;;  %v374_v62 = vsel %vm289_vm1, %v285_v8, 0.0  ;;  %vm830_vm5 = vcmask 1044484  }
  0xac   :  { %vm579_vm6 = vweird.f32 %v1585_v42  ;;  %v585_v40 = vor.u32 1.1754944e-38, %v584_v43  ;;  %v571_v18 = vsel %vm1665_vm2, %v570_v33, %v566_v47  ;;  %v687_v2 = vand.u32 2147483647, %v1550_v23 }
  0xad   :  { %v1641_v11 = vpop.eup %1195  ;;  %v327_v39 = vadd.f32 %v326_v29, %v325_v16  ;;  %v577_v0 = vadd.f32 %v1585_v42, %v576_v25  ;;  %vm832_vm7 = vcmask 1045509   ;;  %v375_v53 = vrot.slane %v374_v62, 4  ;;  %vm1732_vm8 = vmor %vm578_vm15, %vm579_vm6 }
  0xae   :  { %v1630_v4 = vpop.permute.xlu1 %460  ;;  %v604_v35 = vmul.f32 %v1641_v11, %v1558_v17  ;;  %v1685_v31 = vpop.eup %1197  ;;  %v825_v54 = vsel %vm824_vm12, %v527_v59, %v512_v45  ;;  %v359_v12 = vadd.f32 %v358_v55, %v357_v37  ;;  %v324_v22 = vadd.f32 %v323_v50, %v322_v44 }
  0xaf   :  { %v231_v7 = vpop.permute.xlu0 %230  ;;  %v328_v48 = vrot.slane %v327_v39, 2  ;;  %v679_v36 = vmul.f32 %v1685_v31, %v1550_v23  ;;  %1199 = vrcp.f32 %v1630_v4  ;;  %vm608_vm9 = vweird.f32 %v1558_v17 }
  0xb0   :  { %v605_v61 = vsub.f32 1.0, %v604_v35  ;;  %v280_v63 = vmul.f32 %v231_v7, %v184_v49  ;;  %v689_v7 = vand.u32 2147483648, %v1550_v23  ;;  %v581_v19 = vsel %vm1732_vm8, %v1585_v42, %v577_v0  ;;  %v1744_v34 = vpop.permute.xlu2 %495  ;;  %v757_v0 = vld [vmem:[#allocation2 + $0x98] sm:$0xff] }
  0xb1   :  { %v329_v52 = vadd.f32 %v328_v48, %v327_v39  ;;  %v680_v16 = vsub.f32 1.0, %v679_v36  ;;  %v612_v21 = vand.u32 2147483647, %v1558_v17  ;;  %v827_v28 = vsel %vm826_vm13, %v542_v9, %v825_v54  ;;  %v779_v9 = vld [vmem:[#allocation2 + $0x148] sm:$0xff]  ;;  %v741_v54 = vld [vmem:[#allocation2 + $0x18] sm:$0xff] }
  0xb2   :  { %v339_v3 = vsel %vm289_vm1, %v280_v63, 0.0  ;;  %v606_v51 = vmul.f32 %v1641_v11, %v605_v61  ;;  %vm684_vm10 = vweird.f32 %v1685_v31  ;;  %v614_v29 = vand.u32 2147483648, %v1558_v17 }
  0xb3   :  { %v330_v1 = vrot.slane %v329_v52, 1  ;;  %v340_v10 = vrot.slane %v339_v3, 4  ;;  %v376_v26 = vadd.f32 %v375_v53, %v374_v62  ;;  %vm683_vm11 = vweird.f32 %v1550_v23 }
  0xb4   :  { %v607_v42 = vadd.f32 %v1641_v11, %v606_v51  ;;  %vm609_vm0 = vweird.f32 %v1641_v11  ;;  %v572_v35 = vmul.f32 %v571_v18, %v324_v22  ;;  %v681_v39 = vmul.f32 %v1685_v31, %v680_v16  ;;  %vm1808_vm8 = vmor %vm683_vm11, %vm684_vm10 }
  0xb5   :  { %v331_v13 = vadd.f32 %v330_v1, %v329_v52  ;;  %v341_v24 = vadd.f32 %v340_v10, %v339_v3  ;;  %v1746_v15 = vpop.eup %1199  ;;  %v586_v8 = vsel %vm1713_vm4, %v585_v40, %v581_v19  ;;  %1201 = vrcp.f32 %v1744_v34  ;;  %vm1773_vm14 = vmor %vm608_vm9, %vm609_vm0 }
  0xb6   :  { %v236_v14 = vpop.permute.xlu1 %235  ;;  %vm1763_vm2 = vcmp.eq.f32.partialorder %v612_v21, 8.507059e+37  ;;  %v619_v27 = vmul.f32 %v1746_v15, %v1630_v4  ;;  %v829_v45 = vsel %vm828_vm3, %v1512_v41, %v827_v28  ;;  %v377_v25 = vrot.slane %v376_v26, 2 }
  0xb7   :  { %v1710_v56 = vpop.permute.xlu0 %470  ;;  %v342_v32 = vrot.slane %v341_v24, 2  ;;  %v281_v37 = vmul.f32 %v236_v14, %v185_v57  ;;  %v587_v33 = vmul.f32 %v586_v8, %v331_v13  ;;  %v611_v48 = vsel %vm1773_vm14, %v1641_v11, %v607_v42  ;;  %v777_v13 = vld [vmem:[#allocation2 + $0x138] sm:$0xff]  ;;  %v190_v42 = vld [vmem:[%s2066_s0 + $0x68] sm:$0xff] }
  0xb8   :  { %1203 = vrcp.f32 %v1710_v56  ;;  %v831_v41 = vsel %vm830_vm5, %v572_v35, %v829_v45  ;;  %v682_v17 = vadd.f32 %v1685_v31, %v681_v39  ;;  %v615_v55 = vor.u32 1.1754944e-38, %v614_v29  ;;  %999 = vmatpush.msrb.mxu2 %v777_v13  ;;  %v774_v39 = vld [vmem:[#allocation2 + $0x120] sm:$0xff]  ;;  %v755_v8 = vld [vmem:[#allocation2 + $0x88] sm:$0xff]  ;;  %v192_v29 = vld [vmem:[%s2066_s0 + $0x78] sm:$0xff] }
  0xb9   :  { %v343_v44 = vadd.f32 %v342_v32, %v341_v24  ;;  %v346_v47 = vsel %vm289_vm1, %v281_v37, 0.0  ;;  %v833_v59 = vsel %vm832_vm7, %v587_v33, %v831_v41  ;;  %v620_v60 = vsub.f32 1.0, %v619_v27  ;;  %v766_v24 = vld [vmem:[#allocation2 + $0xe0] sm:$0xff]  ;;  %v776_v32 = vld [vmem:[#allocation2 + $0x130] sm:$0xff]  ;;  %930 = vmatpush.msrb.mxu3 %v774_v39 }
  0xba   :  { %vm2072_vm15 = vcmask 1046534   ;;  %v378_v11 = vadd.f32 %v377_v25, %v376_v26  ;;  %v616_v62 = vsel %vm1763_vm2, %v615_v55, %v611_v48  ;;  %vm2071_vm4 = vcmask 1047559   ;;  %976 = vmatpush.msrb.mxu1 %v776_v32  ;;  %1000 = vmatpush.msrb.mxu2 %v766_v24  ;;  %v763_v48 = vld [vmem:[#allocation2 + $0xc8] sm:$0xff] }
  0xbb   :  { %v344_v49 = vrot.slane %v343_v44, 1  ;;  %v1787_v52 = vpop.eup %1201  ;;  %v347_v50 = vrot.slane %v346_v47, 4  ;;  %vm1795_vm6 = vcmp.eq.f32.partialorder %v687_v2, 8.507059e+37  ;;  %v690_v40 = vor.u32 1.1754944e-38, %v689_v7  ;;  %931 = vmatpush.msrb.mxu3 %v763_v48 }
  0xbc   :  { %v1802_v3 = vmul.f32 %v1707_v5, %v359_v12  ;;  %v627_v2 = vand.u32 2147483647, %v1630_v4  ;;  %v835_v7 = vsel %vm2072_vm15, %v1575_v30, %v833_v59  ;;  %v188_v5 = vld [vmem:[%s2066_s0 + $0x58] sm:$0xff]  ;;  %v686_v23 = vsel %vm1808_vm8, %v1685_v31, %v682_v17  ;;  %v752_v59 = vld [vmem:[#allocation2 + $0x70] sm:$0xff]  ;;  %1001 = vmatpush.msrb.mxu2 %v755_v8 }
  0xbd   :  { %v345_v61 = vadd.f32 %v344_v49, %v343_v44  ;;  %v621_v10 = vmul.f32 %v1746_v15, %v620_v60  ;;  %v724_v30 = vmul.f32 %v1787_v52, %v1744_v34  ;;  %v379_v22 = vrot.slane %v378_v11, 1  ;;  %v765_v49 = vld [vmem:[#allocation2 + $0xd8] sm:$0xff]  ;;  %v754_v60 = vld [vmem:[#allocation2 + $0x80] sm:$0xff]  ;;  %932 = vmatpush.msrb.mxu3 %v752_v59 }
  0xbe   :  { %v246_v20 = vpop.permute.xlu1 %245  ;;  %v1799_v53 = vpop.eup %1203  ;;  %vm623_vm9 = vweird.f32 %v1630_v4  ;;  %v629_v6 = vand.u32 2147483648, %v1630_v4  ;;  %v348_v16 = vadd.f32 %v347_v50, %v346_v47  ;;  %v734_v31 = vand.u32 2147483648, %v1744_v34  ;;  %v768_v47 = vld [vmem:[#allocation2 + $0xf0] sm:$0xff]  ;;  %977 = vmatpush.msrb.mxu1 %v765_v49 }
  0xbf   :  { %v1751_v58 = vpop.permute.xlu0 %475  ;;  %v283_v43 = vmul.f32 %v246_v20, %v187_v38  ;;  %v617_v1 = vmul.f32 %v616_v62, %v345_v61  ;;  %v1839_v57 = vmul.f32 %v1799_v53, %v1710_v56  ;;  %v1847_v28 = vsel %vm1795_vm6, %v690_v40, %v686_v23  ;;  %933 = vmatpush.msrb.mxu3 %v741_v54 }
  0xc0   :  { %1205 = vrcp.f32 %v1751_v58  ;;  %vm1849_vm10 = vcmp.eq.f32.partialorder %v627_v2, 8.507059e+37  ;;  %v732_v26 = vand.u32 2147483647, %v1744_v34  ;;  %v622_v37 = vadd.f32 %v1746_v15, %v621_v10  ;;  %978 = vmatpush.msrb.mxu1 %v754_v60  ;;  %v743_v2 = vld [vmem:[#allocation2 + $0x28] sm:$0xff]  ;;  %v746_v10 = vld [vmem:[#allocation2 + $0x40] sm:$0xff] }
  0xc1   :  { %v360_v14 = vsel %vm289_vm1, %v283_v43, 0.0  ;;  %v1826_v12 = vsel %vm2071_vm4, %v617_v1, %v835_v7  ;;  %vm624_vm11 = vweird.f32 %v1746_v15  ;;  %v725_v38 = vsub.f32 1.0, %v724_v30 }
  0xc2   :  { %v361_v18 = vrot.slane %v360_v14, 4  ;;  %1144 = vmatmul.msk.f32.vlgmr.msra.gmra.mxu0 %vm289_vm1, %v1826_v12  ;;  %1146 = vmatmul.msk.f32.vlgmr.msra.gmra.mxu1 %vm289_vm1, %v1826_v12  ;;  %v1866_v27 = vadd.f32 %v379_v22, %v378_v11  ;;  %v630_v44 = vor.u32 1.1754944e-38, %v629_v6  ;;  %v349_v45 = vrot.slane %v348_v16, 2  ;;  %vm1879_vm0 = vmor %vm623_vm9, %vm624_vm11 }
  0xc3   :  { %1148 = vmatmul.msk.f32.vlgmr.msra.gmra.mxu2 %vm289_vm1, %v1826_v12  ;;  %v1870_v41 = vor.u32 1.1754944e-38, %v734_v31  ;;  %v650_v17 = vsub.f32 1.0, %v1839_v57  ;;  %v659_v55 = vand.u32 2147483648, %v1710_v56  ;;  %1045 = vmatpush.msra.mxu0 %v779_v9  ;;  %v626_v40 = vsel %vm1879_vm0, %v1746_v15, %v622_v37 }
  0xc4   :  { %v1841_v19 = vadd.f32 %v361_v18, %v360_v14  ;;  %v726_v4 = vmul.f32 %v1787_v52, %v725_v38  ;;  %v657_v1 = vand.u32 2147483647, %v1710_v56  ;;  %v350_v7 = vadd.f32 %v349_v45, %v348_v16  ;;  %979 = vmatpush.msrb.mxu1 %v743_v2  ;;  %v780_v45 = vld [vmem:[#allocation2 + $0x150] sm:$0xff] }
  0xc5   :  { %1046 = vmatpush.msra.mxu0 %v768_v47  ;;  %v651_v30 = vmul.f32 %v1799_v53, %v650_v17  ;;  %vm653_vm2 = vweird.f32 %v1710_v56  ;;  %v631_v16 = vsel %vm1849_vm10, %v630_v44, %v626_v40  ;;  %v1901_v31 = vor.u32 1.1754944e-38, %v659_v55  ;;  %v770_v44 = vld [vmem:[#allocation2 + $0x100] sm:$0xff] }
  0xc6   :  { %v1791_v36 = vpop.permute.xlu1 %485  ;;  %v1819_v51 = vpop.eup %1205  ;;  %v363_v14 = vrot.slane %v1841_v19, 2  ;;  %vm668_vm14 = vweird.f32 %v1751_v58  ;;  %vm654_vm6 = vweird.f32 %v1799_v53  ;;  %vm1906_vm8 = vcmp.eq.f32.partialorder %v657_v1, 8.507059e+37  ;;  %1068 = vmatpush.msra.mxu1 %v780_v45 }
  0xc7   :  { %v251_v63 = vpop.permute.xlu0 %250  ;;  %1207 = vrcp.f32 %v1791_v36  ;;  %v1856_v20 = vmul.f32 %v1819_v51, %v1751_v58  ;;  %1047 = vmatpush.msra.mxu0 %v757_v0  ;;  %v1919_v37 = vadd.f32 %v1787_v52, %v726_v4  ;;  %v351_v38 = vrot.slane %v350_v7, 1  ;;  %vm1938_vm4 = vmor %vm653_vm2, %vm654_vm6 }
  0xc8   :  { %v284_v21 = vmul.f32 %v251_v63, %v188_v5  ;;  %v744_v63 = vld [vmem:[#allocation2 + $0x30] sm:$0xff]  ;;  %v672_v5 = vand.u32 2147483647, %v1751_v58  ;;  %v364_v22 = vadd.f32 %v363_v14, %v1841_v19  ;;  %v674_v39 = vand.u32 2147483648, %v1751_v58 }
  0xc9   :  { %v665_v11 = vsub.f32 1.0, %v1856_v20  ;;  %1002 = vmatpush.msrb.mxu2 %v744_v63  ;;  %v191_v20 = vld [vmem:[%s2066_s0 + $0x70] sm:$0xff]  ;;  %1048 = vmatpush.msra.mxu0 %v746_v10  ;;  %vm729_vm10 = vweird.f32 %v1787_v52  ;;  %vm669_vm11 = vweird.f32 %v1819_v51  ;;  %vm728_vm0 = vweird.f32 %v1744_v34  ;;  %v769_v10 = vld [vmem:[#allocation2 + $0xf8] sm:$0xff]  ;;  %s1294_s0 = smov [#allocation7]  }
  0xca   :  { %v367_v35 = vsel %vm289_vm1, %v284_v21, 0.0  ;;  %1152 = vmatmul.msk.f32.vlgmr.msrb.gmra.mxu0 %vm289_vm1, %v1826_v12  ;;  %vm1921_vm9 = vcmp.eq.f32.partialorder %v672_v5, 8.507059e+37  ;;  %vm1951_vm15 = vmor %vm668_vm14, %vm669_vm11  ;;  %vm698_vm2 = vweird.f32 %v1791_v36  ;;  %1069 = vmatpush.msra.mxu1 %v769_v10  ;;  %s1128_s9 = sshll.u32 %s1294_s0, 4  ;;  %s1129_s9 = int_to_ptr.vmem [resolvable:$true] %s1128_s9 }
  0xcb   :  { %v368_v46 = vrot.slane %v367_v35, 4  ;;  %v666_v57 = vmul.f32 %v1819_v51, %v665_v11  ;;  %v352_v11 = vadd.f32 %v351_v38, %v350_v7 }
  0xcd   :  { %v1864_v33 = vpop.eup %1207  ;;  %v369_v62 = vadd.f32 %v368_v46, %v367_v35  ;;  %v652_v46 = vadd.f32 %v1799_v53, %v651_v30  ;;  %v667_v47 = vadd.f32 %v1819_v51, %v666_v57  ;;  %v758_v57 = vld [vmem:[#allocation2 + $0xa0] sm:$0xff] }
  0xce   :  { %v261_v25 = vpop.permute.xlu1 %260  ;;  %v694_v18 = vmul.f32 %v1864_v33, %v1791_v36  ;;  %vm699_vm6 = vweird.f32 %v1864_v33  ;;  %1070 = vmatpush.msra.mxu1 %v758_v57 }
  0xcf   :  { %v1868_v43 = vpop.permute.xlu0 %490  ;;  %v286_v50 = vmul.f32 %v261_v25, %v190_v42  ;;  %v370_v23 = vrot.slane %v369_v62, 2  ;;  %v781_v42 = vld [vmem:[#allocation2 + $0x158] sm:$0xff]  ;;  %v365_v25 = vrot.slane %v364_v22, 1  ;;  %v656_v40 = vsel %vm1938_vm4, %v1799_v53, %v652_v46 }
  0xd0   :  { %1209 = vrcp.f32 %v1868_v43  ;;  %v695_v19 = vsub.f32 1.0, %v694_v18  ;;  %1091 = vmatpush.msra.mxu2 %v781_v42  ;;  %v671_v54 = vsel %vm1951_vm15, %v1819_v51, %v667_v47  ;;  %vm1963_vm4 = vcmp.eq.f32.partialorder %v732_v26, 8.507059e+37  ;;  %v748_v26 = vld [vmem:[#allocation2 + $0x50] sm:$0xff]  ;;  %vm1979_vm15 = vmor %vm698_vm2, %vm699_vm6 }
  0xd1   :  { %v381_v15 = vsel %vm289_vm1, %v286_v50, 0.0  ;;  %v371_v13 = vadd.f32 %v370_v23, %v369_v62  ;;  %v675_v50 = vor.u32 1.1754944e-38, %v674_v39  ;;  %v366_v4 = vadd.f32 %v365_v25, %v364_v22 }
  0xd2   :  { %v382_v6 = vrot.slane %v381_v15, 4  ;;  %1092 = vmatpush.msra.mxu2 %v770_v44  ;;  %v696_v14 = vmul.f32 %v1864_v33, %v695_v19  ;;  %v632_v51 = vmul.f32 %v631_v16, %v352_v11  ;;  %v661_v30 = vsel %vm1906_vm8, %v1901_v31, %v656_v40  ;;  %vm1993_vm8 = vmor %vm728_vm0, %vm729_vm10  ;;  %v2050_v40 = vld [vmem:[#allocation5] sm:$0xff] }
  0xd3   :  { %v372_v59 = vrot.slane %v371_v13, 1  ;;  %v704_v22 = vand.u32 2147483648, %v1791_v36  ;;  %v662_v19 = vmul.f32 %v661_v30, %v366_v4  ;;  %v719_v21 = vand.u32 2147483648, %v1868_v43 }
  0xd4   :  { %v383_v24 = vadd.f32 %v382_v6, %v381_v15  ;;  %v697_v2 = vadd.f32 %v1864_v33, %v696_v14  ;;  %v759_v15 = vld [vmem:[#allocation2 + $0xa8] sm:$0xff]  ;;  %v717_v44 = vand.u32 2147483647, %v1868_v43  ;;  %v838_v46 = vsel %vm824_vm12, %v1802_v3, %v632_v51 }
  0xd5   :  { %v373_v7 = vadd.f32 %v372_v59, %v371_v13  ;;  %1093 = vmatpush.msra.mxu2 %v759_v15  ;;  %v676_v13 = vsel %vm1921_vm9, %v675_v50, %v671_v54  ;;  %vm713_vm9 = vweird.f32 %v1868_v43  ;;  %v720_v3 = vor.u32 1.1754944e-38, %v719_v21 }
  0xd6   :  { %v1916_v32 = vpop.eup %1209  ;;  %v271_v8 = vpop.permute.xlu1 %270  ;;  %v384_v48 = vrot.slane %v383_v24, 2  ;;  %v701_v38 = vsel %vm1979_vm15, %v1864_v33, %v697_v2  ;;  %v731_v33 = vsel %vm1993_vm8, %v1787_v52, %v1919_v37  ;;  %vm718_vm12 = vcmp.eq.f32.partialorder %v717_v44, 8.507059e+37 }
  0xd7   :  { %v266_v9 = vpop.permute.xlu0 %265  ;;  %v709_v49 = vmul.f32 %v1916_v32, %v1868_v43  ;;  %v288_v17 = vmul.f32 %v271_v8, %v192_v29  ;;  %vm714_vm14 = vweird.f32 %v1916_v32  ;;  %1094 = vmatpush.msra.mxu2 %v748_v26  ;;  %v677_v35 = vmul.f32 %v676_v13, %v373_v7 }
  0xd8   :  { %v287_v55 = vmul.f32 %v266_v9, %v191_v20  ;;  %v385_v60 = vadd.f32 %v384_v48, %v383_v24  ;;  %v702_v24 = vand.u32 2147483647, %v1791_v36  ;;  %v747_v20 = vld [vmem:[#allocation2 + $0x48] sm:$0xff]  ;;  %v705_v9 = vor.u32 1.1754944e-38, %v704_v22  ;;  %vm2007_vm10 = vmor %vm713_vm9, %vm714_vm14 }
  0xd9   :  { %v710_v61 = vsub.f32 1.0, %v709_v49  ;;  %v395_v63 = vsel %vm289_vm1, %v288_v17, 0.0  ;;  %1071 = vmatpush.msra.mxu1 %v747_v20  ;;  %v839_v43 = vsel %vm826_vm13, %v662_v19, %v838_v46  ;;  %v736_v14 = vsel %vm1963_vm4, %v1870_v41, %v731_v33  ;;  %v745_v41 = vld [vmem:[#allocation2 + $0x38] sm:$0xff]  ;;  %v783_v22 = vld [vmem:[#allocation5 + $0x8] sm:$0x7] }
  0xda   :  { %v388_v0 = vsel %vm289_vm1, %v287_v55, 0.0  ;;  %v396_v1 = vrot.slane %v395_v63, 4  ;;  %v386_v5 = vrot.slane %v385_v60, 1  ;;  %vm703_vm11 = vcmp.eq.f32.partialorder %v702_v24, 8.507059e+37 }
  0xdb   :  { %v389_v18 = vrot.slane %v388_v0, 4  ;;  %v711_v53 = vmul.f32 %v1916_v32, %v710_v61  ;;  %v706_v48 = vsel %vm703_vm11, %v705_v9, %v701_v38  ;;  %v840_v52 = vsel %vm828_vm3, %v677_v35, %v839_v43 }
  0xdc   :  { %v397_v23 = vadd.f32 %v396_v1, %v395_v63  ;;  %v387_v39 = vadd.f32 %v386_v5, %v385_v60  ;;  %v692_v55 = vmul.f32 %v1847_v28, %v1866_v27  ;;  %vm2131_vm13 = vcmask 1046534   ;;  %v767_v28 = vld [vmem:[#allocation2 + $0xe8] sm:$0xff]  ;;  %v756_v27 = vld [vmem:[#allocation2 + $0x90] sm:$0xff] }
  0xdd   :  { %v390_v6 = vadd.f32 %v389_v18, %v388_v0  ;;  %v712_v31 = vadd.f32 %v1916_v32, %v711_v53  ;;  %vm2132_vm3 = vcmask 1047559   ;;  %v778_v0 = vld [vmem:[#allocation2 + $0x140] sm:$0xff]  ;;  %v786_v4 = vperm.slane %v2050_v40, 0 }
  0xde   :  { %v398_v29 = vrot.slane %v397_v23, 2  ;;  %v707_v37 = vmul.f32 %v706_v48, %v387_v39  ;;  %v841_v11 = vsel %vm830_vm5, %v692_v55, %v840_v52  ;;  %v787_v56 = vperm.slane %v2050_v40, 1 }
  0xdf   :  { %v391_v42 = vrot.slane %v390_v6, 2  ;;  %v716_v49 = vsel %vm2007_vm10, %v1916_v32, %v712_v31  ;;  %v790_v58 = vperm.slane %v2050_v40, 4  ;;  %v794_v57 = vperm.slane %v783_v22, 0 }
  0xe0   :  { %v399_v36 = vadd.f32 %v398_v29, %v397_v23  ;;  %v721_v61 = vsel %vm718_vm12, %v720_v3, %v716_v49  ;;  %v842_v62 = vsel %vm832_vm7, %v707_v37, %v841_v11  ;;  %v789_v21 = vperm.slane %v2050_v40, 3 }
  0xe1   :  { %v392_v45 = vadd.f32 %v391_v42, %v390_v6  ;;  %v791_v6 = vperm.slane %v2050_v40, 5  ;;  %v792_v42 = vperm.slane %v2050_v40, 6  ;;  %v795_v33 = vperm.slane %v783_v22, 1 }
  0xe2   :  { %v400_v25 = vrot.slane %v399_v36, 1  ;;  %v796_v52 = vperm.slane %v783_v22, 2 }
  0xe3   :  { %v393_v47 = vrot.slane %v392_v45, 1 }
  0xe4   :  { %v401_v17 = vadd.f32 %v400_v25, %v399_v36 }
  0xe5   :  { %v394_v59 = vadd.f32 %v393_v47, %v392_v45  ;;  %v793_v47 = vperm.slane %v2050_v40, 7 }
  0xe6   :  { %v737_v60 = vmul.f32 %v736_v14, %v401_v17 }
  0xe7   :  { %v722_v32 = vmul.f32 %v721_v61, %v394_v59 }
  0xe9   :  { %v843_v50 = vsel %vm2131_vm13, %v722_v32, %v842_v62 }
  0xea   :  { %v844_v63 = vsel %vm2132_vm3, %v737_v60, %v843_v50 }
  0xeb   :  { %1145 = vmatmul.msk.f32.vlgmr.msra.gmra.mxu3 %vm289_vm1, %v844_v63  ;;  %1147 = vmatmul.msk.f32.gmra.mxu1 %vm289_vm1, %v844_v63 }
  0xec   :  { %1149 = vmatmul.msk.f32.gmra.mxu2 %vm289_vm1, %v844_v63  ;;  %1153 = vmatmul.msk.f32.gmra.mxu0 %vm289_vm1, %v844_v63 }
  0xed   :  { %1022 = vmatpush.msra.mxu3 %v778_v0 }
  0xef   :  { %1023 = vmatpush.msra.mxu3 %v767_v28 }
  0xf1   :  { %1024 = vmatpush.msra.mxu3 %v756_v27 }
  0xf3   :  { %1150 = vmatmul.msk.f32.vlgmr.msrb.gmra.mxu3 %vm289_vm1, %v1826_v12  ;;  %1154 = vmatmul.msk.f32.vlgmr.msrb.gmra.mxu1 %vm289_vm1, %v1826_v12 }
  0xf4   :  { %1156 = vmatmul.msk.f32.vlgmr.msrb.gmra.mxu2 %vm289_vm1, %v1826_v12  ;;  %1160 = vmatmul.msk.f32.vlgmr.msra.gmra.mxu0 %vm289_vm1, %v1826_v12 }
  0xf5   :  { %1025 = vmatpush.msra.mxu3 %v745_v41 }
  0xfb   :  { %1151 = vmatmul.msk.f32.gmra.mxu3 %vm289_vm1, %v844_v63  ;;  %1155 = vmatmul.msk.f32.gmra.mxu1 %vm289_vm1, %v844_v63 }
  0xfc   :  { %1157 = vmatmul.msk.f32.gmra.mxu2 %vm289_vm1, %v844_v63  ;;  %1161 = vmatmul.msk.f32.gmra.mxu0 %vm289_vm1, %v844_v63 }
 0x103   :  { %1158 = vmatmul.msk.f32.vlgmr.msra.gmra.mxu3 %vm289_vm1, %v1826_v12  ;;  %1162 = vmatmul.msk.f32.vlgmr.msra.gmra.mxu1 %vm289_vm1, %v1826_v12 }
 0x104   :  { %1164 = vmatmul.msk.f32.vlgmr.msra.gmra.mxu2 %vm289_vm1, %v1826_v12  ;;  %v788_v12 = vperm.slane %v2050_v40, 2 }
 0x10b   :  { %1159 = vmatmul.msk.f32.gmra.mxu3 %vm289_vm1, %v844_v63  ;;  %1163 = vmatmul.msk.f32.gmra.mxu1 %vm289_vm1, %v844_v63 }
 0x10c   :  { %1165 = vmatmul.msk.f32.gmra.mxu2 %vm289_vm1, %v844_v63 }
 0x13f   :  { %v866_v1 = vpop.f32.mrf.mxu0  ;;  %v889_v18 = vpop.f32.mrf.mxu1 }
 0x140   :  { %v867_v54 = vadd.f32 %v866_v1, %v786_v4  ;;  %v890_v53 = vadd.f32 %v889_v18, %v787_v56 }
 0x142   :  { %1102 = vst [vmem:[#allocation7] sm:$0xff] %v867_v54 }
 0x143   :  { %1103 = vst [vmem:[#allocation7 + $0x8] sm:$0xff] %v890_v53 }
 0x146   :  { %v912_v2 = vpop.f32.mrf.mxu2 }
 0x147   :  { %v913_v7 = vadd.f32 %v912_v2, %v788_v12  ;;  %v958_v5 = vpop.f32.mrf.mxu0 }
 0x148   :  { %v959_v23 = vadd.f32 %v958_v5, %v790_v58 }
 0x149   :  { %1104 = vst [vmem:[#allocation7 + $0x10] sm:$0xff] %v913_v7 }
 0x14a   :  { %1106 = vst [vmem:[#allocation7 + $0x20] sm:$0xff] %v959_v23 }
 0x168   :  { %v892_v15 = vpop.f32.mrf.mxu1 }
 0x169   :  { %v893_v10 = vadd.f32 %v892_v15, %v787_v56  ;;  %v961_v51 = vpop.f32.mrf.mxu0 }
 0x16a   :  { %v962_v30 = vadd.f32 %v961_v51, %v790_v58 }
 0x16b   :  { %1114 = vst [vmem:[#allocation7 + $0x60] sm:$0xff] %v893_v10 }
 0x16c   :  { %1117 = vst [vmem:[#allocation7 + $0x78] sm:$0xff] %v962_v30 }
 0x16e   :  { %v869_v26 = vpop.f32.mrf.mxu3 }
 0x16f   :  { %v870_v19 = vadd.f32 %v869_v26, %v786_v4  ;;  %v915_v24 = vpop.f32.mrf.mxu2 }
 0x170   :  { %v916_v13 = vadd.f32 %v915_v24, %v788_v12  ;;  %v981_v29 = vpop.f32.mrf.mxu1 }
 0x171   :  { %1113 = vst [vmem:[#allocation7 + $0x58] sm:$0xff] %v870_v19  ;;  %v982_v20 = vadd.f32 %v981_v29, %v791_v6  ;;  %v1050_v16 = vpop.f32.mrf.mxu0 }
 0x172   :  { %1115 = vst [vmem:[#allocation7 + $0x68] sm:$0xff] %v916_v13  ;;  %v1051_v31 = vadd.f32 %v1050_v16, %v794_v57 }
 0x173   :  { %1107 = vst [vmem:[#allocation7 + $0x28] sm:$0xff] %v982_v20 }
 0x174   :  { %1110 = vst [vmem:[#allocation7 + $0x40] sm:$0xff] %v1051_v31 }
 0x176   :  { %v935_v38 = vpop.f32.mrf.mxu3 }
 0x177   :  { %v936_v35 = vadd.f32 %v935_v38, %v789_v21  ;;  %v1004_v39 = vpop.f32.mrf.mxu2 }
 0x178   :  { %v1005_v36 = vadd.f32 %v1004_v39, %v792_v42  ;;  %v984_v8 = vpop.f32.mrf.mxu1 }
 0x179   :  { %1105 = vst [vmem:[#allocation7 + $0x18] sm:$0xff] %v936_v35  ;;  %v985_v9 = vadd.f32 %v984_v8, %v791_v6  ;;  %v1053_v44 = vpop.f32.mrf.mxu0 }
 0x17a   :  { %1108 = vst [vmem:[#allocation7 + $0x30] sm:$0xff] %v1005_v36  ;;  %v1054_v45 = vadd.f32 %v1053_v44, %v794_v57 }
 0x17b   :  { %1118 = vst [vmem:[#allocation7 + $0x80] sm:$0xff] %v985_v9 }
 0x17c   :  { %1121 = vst [vmem:[#allocation7 + $0x98] sm:$0xff] %v1054_v45 }
 0x17e   :  { %v938_v46 = vpop.f32.mrf.mxu3 }
 0x17f   :  { %v939_v34 = vadd.f32 %v938_v46, %v789_v21  ;;  %v1007_v25 = vpop.f32.mrf.mxu2 }
 0x180   :  { %v1008_v43 = vadd.f32 %v1007_v25, %v792_v42  ;;  %v1073_v48 = vpop.f32.mrf.mxu1 }
 0x181   :  { %1116 = vst [vmem:[#allocation7 + $0x70] sm:$0xff] %v939_v34  ;;  %v1074_v49 = vadd.f32 %v1073_v48, %v795_v33 }
 0x182   :  { %1119 = vst [vmem:[#allocation7 + $0x88] sm:$0xff] %v1008_v43 }
 0x183   :  { %1111 = vst [vmem:[#allocation7 + $0x48] sm:$0xff] %v1074_v49 }
 0x186   :  { %v1027_v37 = vpop.f32.mrf.mxu3 }
 0x187   :  { %v1028_v3 = vadd.f32 %v1027_v37, %v793_v47  ;;  %v1096_v17 = vpop.f32.mrf.mxu2 }
 0x188   :  { %v1097_v55 = vadd.f32 %v1096_v17, %v796_v52  ;;  %v1076_v14 = vpop.f32.mrf.mxu1 }
 0x189   :  { %1109 = vst [vmem:[#allocation7 + $0x38] sm:$0xff] %v1028_v3  ;;  %v1077_v59 = vadd.f32 %v1076_v14, %v795_v33 }
 0x18a   :  { %1112 = vst [vmem:[#allocation7 + $0x50] sm:$0xff] %v1097_v55 }
 0x18b   :  { %1122 = vst [vmem:[#allocation7 + $0xa0] sm:$0xff] %v1077_v59 }
 0x18e   :  { %v1030_v60 = vpop.f32.mrf.mxu3 }
 0x18f   :  { %v1031_v61 = vadd.f32 %v1030_v60, %v793_v47  ;;  %v1099_v11 = vpop.f32.mrf.mxu2 }
 0x190   :  { %v1100_v32 = vadd.f32 %v1099_v11, %v796_v52 }
 0x191   :  { %1120 = vst [vmem:[#allocation7 + $0x90] sm:$0xff] %v1031_v61 }
 0x192   :  { %1123 = vst [vmem:[#allocation7 + $0xa8] sm:$0xff] %v1100_v32 }
 0x193   :  { %1136 = dma.vmem_to_hbm [thread:$0]  %s1129_s9, 2816, %s1131_s12, [#allocation4], %s1290_s23, %s1290_s23, %s1291_s24  }
 0x194   :  { %1287 = dma.done.wait [#allocation4], 2816  }
 0x195   :  { %1288 = vsyncadd [#allocation4], 4294964480 }
 0x196   :  { %1141 = vsyncpa [#allocation3], 1 }
 0x197   :  { %1142 = vsyncpa [#allocation6], 1 }
 0x198   :  { %1143 = vsyncpa [#allocation4], 1 }

</bundles_post_ra>
